<compile_context>
chip_gen: v7x
topology: tpu7x:2x2x1
jax: 0.10.0
libtpu: 0.0.40
codegen_flags: <defaults>
</compile_context>

<pallas_src>
import functools
import math

import jax
import jax.numpy as jnp
from jax.experimental import pallas as pl
from jax.experimental.pallas import tpu as pltpu


def _rmsnorm_kernel(x_ref, w_ref, b_ref, o_ref, *, eps: float):
    # x_ref: (TM, D) block; w_ref/b_ref: (1, D) resident blocks.
    x = x_ref[...].astype(jnp.float32)
    ms = jnp.mean(x * x, axis=-1, keepdims=True)            # (TM, 1)
    inv = jax.lax.rsqrt(ms + eps)                            # EUP rsqrt, cheap
    y = x * inv
    y = y * w_ref[...].astype(jnp.float32) + b_ref[...].astype(jnp.float32)
    o_ref[...] = y.astype(o_ref.dtype)


def _choose_row_tile(rows: int, d: int, itemsize: int) -> int:
    """Largest row tile that (a) evenly divides rows, (b) is sublane-aligned,
    and (c) keeps x + out double-buffered comfortably inside v7x's VMEM."""
    budget = 16 * 1024 * 1024  # conservative: 2 big refs x 2 buffers must fit
    for tm in (2048, 1024, 512, 256, 128, 64, 32, 16, 8):
        if tm <= rows and rows % tm == 0 and 4 * tm * d * itemsize <= budget:
            return tm
    return rows  # tiny input: single full-extent block (always legal)


def rmsnorm_forward(x: jnp.ndarray,
                    weight: jnp.ndarray,
                    bias: jnp.ndarray,
                    eps: float = 1e-6) -> jnp.ndarray:
    """x: (..., D); weight, bias: (D,). Returns RMSNorm(x) in x.dtype."""
    orig_shape = x.shape
    D = orig_shape[-1]
    assert weight.shape == (D,) and bias.shape == (D,)

    rows = math.prod(orig_shape[:-1]) if len(orig_shape) > 1 else 1
    x2 = x.reshape(rows, D)
    w2 = weight.reshape(1, D).astype(x.dtype)
    b2 = bias.reshape(1, D).astype(x.dtype)

    tm = _choose_row_tile(rows, D, x2.dtype.itemsize)
    grid = (pl.cdiv(rows, tm),)

    out = pl.pallas_call(
        functools.partial(_rmsnorm_kernel, eps=eps),
        out_shape=jax.ShapeDtypeStruct((rows, D), x.dtype),
        grid=grid,
        in_specs=[
            pl.BlockSpec((tm, D), lambda i: (i, 0)),   # streamed row tile of x
            pl.BlockSpec((1, D), lambda i: (0, 0)),    # weight: resident, never re-fetched
            pl.BlockSpec((1, D), lambda i: (0, 0)),    # bias:   resident, never re-fetched
        ],
        out_specs=pl.BlockSpec((tm, D), lambda i: (i, 0)),
        compiler_params=pltpu.CompilerParams(
            dimension_semantics=("parallel",),         # row tiles are independent -> megacore
            vmem_limit_bytes=32 * 1024 * 1024,         # safe on v7x (64 MiB physical)
        ),
    )(x2, w2, b2)

    return out.reshape(orig_shape)


if __name__ == "__main__":
    # Small shapes consistent with the module: batch=2, seq=8, hidden(dim)=32
    B, S, D = 2, 8, 32
    EPS = 1e-6

    key = jax.random.PRNGKey(0)
    kx, kw, kb = jax.random.split(key, 3)
    x = jax.random.normal(kx, (B, S, D), dtype=jnp.float32)
    # Module initializes weight=ones, bias=zeros; use random params to exercise
    # the full forward semantics deterministically.
    weight = 1.0 + 0.1 * jax.random.normal(kw, (D,), dtype=jnp.float32)
    bias = 0.1 * jax.random.normal(kb, (D,), dtype=jnp.float32)

    out = rmsnorm_forward(x, weight, bias, eps=EPS)
    out = jax.block_until_ready(out)

    # Pure-JAX reference (same math as the torch forward).
    rms = jnp.sqrt(jnp.mean(x.astype(jnp.float32) ** 2, axis=-1, keepdims=True) + EPS)
    ref = (x / rms) * weight + bias

    assert out.shape == (B, S, D)
    assert jnp.allclose(out, ref, atol=1e-5, rtol=1e-5), "mismatch vs reference"

    print("KERNEL_OK")
</pallas_src>

<mosaic_0001>
module attributes {stable_mosaic.version = 11 : i64} {
  func.func @_rmsnorm_kernel(%arg0: i32, %arg1: memref<16x32xf32, #tpu.memory_space<vmem>>, %arg2: memref<1x32xf32, #tpu.memory_space<vmem>>, %arg3: memref<1x32xf32, #tpu.memory_space<vmem>>, %arg4: memref<16x32xf32, #tpu.memory_space<vmem>>) attributes {dimension_semantics = [#tpu.dimension_semantics<parallel>], iteration_bounds = array<i64: 1>, scalar_prefetch = 0 : i64, scratch_operands = 0 : i64, tpu.core_type = #tpu.core_type<tc>, window_params = [{transform_indices = @transform_0, window_bounds = array<i64: 16, 32>}, {pipeline_mode = #tpu.pipeline_mode<synchronous>, transform_indices = @transform_1, window_bounds = array<i64: 1, 32>}, {pipeline_mode = #tpu.pipeline_mode<synchronous>, transform_indices = @transform_2, window_bounds = array<i64: 1, 32>}, {transform_indices = @transform_3, window_bounds = array<i64: 16, 32>}]} {
    %c0 = arith.constant 0 : index
    %c0_0 = arith.constant 0 : index
    %0 = vector.load %arg1[%c0, %c0_0] : memref<16x32xf32, #tpu.memory_space<vmem>>, vector<16x32xf32>
    %1 = arith.mulf %0, %0 : vector<16x32xf32>
    %cst = arith.constant dense<0.000000e+00> : vector<16xf32>
    %2 = vector.multi_reduction <add>, %1, %cst [1] : vector<16x32xf32> to vector<16xf32>
    %3 = vector.shape_cast %2 : vector<16xf32> to vector<16x1xf32>
    %cst_1 = arith.constant 3.200000e+01 : f32
    %4 = vector.broadcast %cst_1 : f32 to vector<16x1xf32>
    %5 = arith.divf %3, %4 : vector<16x1xf32>
    %cst_2 = arith.constant 9.99999997E-7 : f32
    %6 = vector.broadcast %cst_2 : f32 to vector<16x1xf32>
    %7 = arith.addf %5, %6 : vector<16x1xf32>
    %8 = math.rsqrt %7 : vector<16x1xf32>
    %9 = vector.broadcast %8 : vector<16x1xf32> to vector<16x32xf32>
    %10 = arith.mulf %0, %9 : vector<16x32xf32>
    %c0_3 = arith.constant 0 : index
    %c0_4 = arith.constant 0 : index
    %11 = vector.load %arg2[%c0_3, %c0_4] : memref<1x32xf32, #tpu.memory_space<vmem>>, vector<1x32xf32>
    %12 = vector.broadcast %11 : vector<1x32xf32> to vector<16x32xf32>
    %13 = arith.mulf %10, %12 : vector<16x32xf32>
    %c0_5 = arith.constant 0 : index
    %c0_6 = arith.constant 0 : index
    %14 = vector.load %arg3[%c0_5, %c0_6] : memref<1x32xf32, #tpu.memory_space<vmem>>, vector<1x32xf32>
    %15 = vector.broadcast %14 : vector<1x32xf32> to vector<16x32xf32>
    %16 = arith.addf %13, %15 : vector<16x32xf32>
    %c0_7 = arith.constant 0 : index
    %c0_8 = arith.constant 0 : index
    %17 = vector.load %arg4[%c0_7, %c0_8] : memref<16x32xf32, #tpu.memory_space<vmem>>, vector<16x32xf32>
    tpu.vector_store %arg4[%c0_7, %c0_8], %16 {strides = array<i32>} : memref<16x32xf32, #tpu.memory_space<vmem>>, vector<16x32xf32>,
    return
  }
  func.func @transform_0(%arg0: i32) -> (i32, i32) {
    %c0_i32 = arith.constant 0 : i32
    %c0_i32_0 = arith.constant 0 : i32
    return %arg0, %c0_i32 : i32, i32
  }
  func.func @transform_1(%arg0: i32) -> (i32, i32) {
    %c0_i32 = arith.constant 0 : i32
    %c0_i32_0 = arith.constant 0 : i32
    %c0_i32_1 = arith.constant 0 : i32
    return %c0_i32, %c0_i32_0 : i32, i32
  }
  func.func @transform_2(%arg0: i32) -> (i32, i32) {
    %c0_i32 = arith.constant 0 : i32
    %c0_i32_0 = arith.constant 0 : i32
    %c0_i32_1 = arith.constant 0 : i32
    return %c0_i32, %c0_i32_0 : i32, i32
  }
  func.func @transform_3(%arg0: i32) -> (i32, i32) {
    %c0_i32 = arith.constant 0 : i32
    %c0_i32_0 = arith.constant 0 : i32
    return %arg0, %c0_i32 : i32, i32
  }
}

</mosaic_0001>

<bundles_post_ra>
// kernel: tpu_custom_call.1
= control target key start
LH: loop header
LB: loop body
LE: loop exit
PB: predicated region body
PF: predicated region fallthrough
CT: control target
= control target key end

     0   :  { %8 = vsyncpa [#allocation3], 0  ;;  %s208_s0 = inlined_call_operand.hbm [shape: f32[16,32], index: 0, kind: input, shape index: {}]   ;;  %s209_s1 = inlined_call_operand.vmem [shape: f32[1,32], index: 1, kind: input, shape index: {}]   ;;  %s210_s2 = inlined_call_operand.vmem [shape: f32[1,32], index: 2, kind: input, shape index: {}]   ;;  %s211_s3 = inlined_call_operand.hbm [shape: f32[16,32], index: 3, kind: output, shape index: {}]  }
   0x1   :  { %9 = vsyncpa [#allocation4], 0  ;;  %s144_s12 = smov [#allocation2]   ;;  %s96_s16 = scalar_lea.hbm %s208_s0, 256 }
   0x2   :  { %s15_s13 = sshll.u32 %s144_s12, 4  ;;  %p97_p0 = scmp.ne.s32.totalorder %s208_s0, %s96_s16  ;;  %s16_s13 = int_to_ptr.vmem [resolvable:$true] %s15_s13 }
   0x3   :  { %p100_p1 = scmp.lt.u32.totalorder %s96_s16, %s208_s0 }
   0x5   :  { %p102_p2 = pnand %p100_p1, %p97_p0 }
   0x7   :  { %105 = shalt.err (!%p102_p2)
}
   0x8   :  { %s106_s21 = scalar_lea.vmem %s16_s13, 256  ;;  %p111_p4 = scmp.lt.s32.totalorder %s16_s13, %s16_s13 }
   0x9   :  { %p107_p3 = scmp.ne.s32.totalorder %s16_s13, %s106_s21  ;;  %p112_p5 = scmp.lt.s32.totalorder %s106_s21, %s106_s21 }
   0xb   :  { %p113_p6 = por %p112_p5, %p111_p4 }
   0xd   :  { %p114_p7 = pnand %p113_p6, %p107_p3 }
   0xf   :  { %117 = shalt.err (!%p114_p7)
}
  0x10   :  { %s145_s22 = smov 128   ;;  %s146_s23 = smov 8  }
  0x11   :  { %21 = dma.hbm_to_vmem [thread:$0]  %s208_s0, 256, %s16_s13, [#allocation3], %s145_s22, %s145_s22, %s146_s23  }
  0x12   :  { %140 = dma.done.wait [#allocation3], 256  }
  0x13   :  { %141 = vsyncadd [#allocation3], 4294967040  ;;  %v29_v0 = vld [vmem:[#allocation2] sm:$0xff]  ;;  %vm33_vm0 = vcmask 261120   ;;  %v30_v1 = vld [vmem:[#allocation2 + $0x8] sm:$0xff]  ;;  %s147_s29 = smov [#allocation5]  }
  0x14   :  { %v31_v2 = vmul.f32 %v29_v0, %v29_v0  ;;  %v32_v3 = vmul.f32 %v30_v1, %v30_v1  ;;  %v86_v13 = vld [vmem:[%s209_s1] ss:$0 sm:$0xff]  ;;  %s74_s30 = sshll.u32 %s147_s29, 4  ;;  %s75_s30 = int_to_ptr.vmem [resolvable:$true] %s74_s30 }
  0x15   :  { %v87_v15 = vld [vmem:[%s210_s2] ss:$0 sm:$0xff]  ;;  %s118_s4 = scalar_lea.vmem %s75_s30, 256  ;;  %p123_p9 = scmp.lt.s32.totalorder %s75_s30, %s75_s30 }
  0x16   :  { %v34_v4 = vsel %vm33_vm0, %v31_v2, 0.0  ;;  %v37_v5 = vsel %vm33_vm0, %v32_v3, 0.0  ;;  %p119_p8 = scmp.ne.s32.totalorder %s75_s30, %s118_s4  ;;  %p124_p10 = scmp.lt.s32.totalorder %s118_s4, %s118_s4 }
  0x17   :  { %35 = vadd.xlane.f32.xlu0 %v34_v4 }
  0x18   :  { %p125_p11 = por %p124_p10, %p123_p9 }
  0x1a   :  { %p126_p12 = pnand %p125_p11, %p119_p8 }
  0x1b   :  { %38 = vadd.xlane.f32.xlu0 %v37_v5 }
  0xa4   :  { %v36_v6 = vpop.xlane.xlu0 %35 }
  0xa5   :  { %v41_v7 = vmul.f32 0.03125, %v36_v6 }
  0xa7   :  { %v43_v8 = vadd.f32 1e-06, %v41_v7 }
  0xa8   :  { %v39_v9 = vpop.xlane.xlu0 %38 }
  0xa9   :  { %92 = vrsqrt.f32 %v43_v8  ;;  %v42_v10 = vmul.f32 0.03125, %v39_v9 }
  0xab   :  { %v44_v11 = vadd.f32 1e-06, %v42_v10 }
  0xad   :  { %94 = vrsqrt.f32 %v44_v11 }
  0xb3   :  { %v93_v12 = vpop.eup %92 }
  0xb4   :  { %v47_v14 = vmul.f32 %v93_v12, %v29_v0 }
  0xb6   :  { %v56_v16 = vmul.f32 %v86_v13, %v47_v14 }
  0xb7   :  { %v95_v17 = vpop.eup %94 }
  0xb8   :  { %v48_v18 = vmul.f32 %v95_v17, %v30_v1  ;;  %v65_v19 = vadd.f32 %v87_v15, %v56_v16 }
  0xba   :  { %v57_v20 = vmul.f32 %v86_v13, %v48_v18  ;;  %67 = vst.msk [vmem:[#allocation5] sm:$0xff] %vm33_vm0, %v65_v19 }
  0xbc   :  { %v66_v21 = vadd.f32 %v87_v15, %v57_v20 }
  0xbe   :  { %68 = vst.msk [vmem:[#allocation5 + $0x8] sm:$0xff] %vm33_vm0, %v66_v21 }
  0xbf   :  { %129 = shalt.err (!%p126_p12)
}
  0xc0   :  { %s130_s5 = scalar_lea.hbm %s211_s3, 256 }
  0xc1   :  { %p131_p13 = scmp.ne.s32.totalorder %s211_s3, %s130_s5  ;;  %p134_p0 = scmp.lt.u32.totalorder %s130_s5, %s211_s3 }
  0xc3   :  { %p136_p1 = pnand %p134_p0, %p131_p13 }
  0xc5   :  { %139 = shalt.err (!%p136_p1)
}
  0xc6   :  { %80 = dma.vmem_to_hbm [thread:$0]  %s75_s30, 256, %s211_s3, [#allocation4], %s145_s22, %s145_s22, %s146_s23  }
  0xc7   :  { %142 = dma.done.wait [#allocation4], 256  }
  0xc8   :  { %143 = vsyncadd [#allocation4], 4294967040 }
  0xc9   :  { %84 = vsyncpa [#allocation3], 1 }
  0xca   :  { %85 = vsyncpa [#allocation4], 1 }

</bundles_post_ra>
